<compile_context>
chip_gen: v6e
topology: v6e:2x2x1
jax: 0.10.0
libtpu: 0.0.40
codegen_flags: <defaults>
</compile_context>

<pallas_src>
import functools

import jax
import jax.numpy as jnp
from jax import lax
from jax.experimental import pallas as pl
from jax.experimental.pallas import tpu as pltpu


def _round_up(x, m):
    return ((x + m - 1) // m) * m


# ----------------------------------------------------------------------------
# Path A: VMEM-resident table, one-hot MXU gather.
# ----------------------------------------------------------------------------
def _make_resident_kernel(V):
    def kernel(idx_ref, table_ref, out_ref):
        # idx_ref:   (tile, 1) int32 in VMEM
        # table_ref: (V, D) table, VMEM-resident (constant index_map)
        # out_ref:   (tile, D) output block
        ids = idx_ref[...]                                              # (tile, 1)
        iota = lax.broadcasted_iota(jnp.int32, (ids.shape[0], V), 1)    # (tile, V)
        onehot = (ids == iota).astype(table_ref.dtype)                  # (tile, V)
        out_ref[...] = jnp.dot(
            onehot, table_ref[...], preferred_element_type=jnp.float32
        ).astype(out_ref.dtype)

    return kernel


# ----------------------------------------------------------------------------
# Path B: HBM table, DMA row gather straight into out_ref.
# ----------------------------------------------------------------------------
def _make_dma_gather_kernel(tile, V):
    use_fori = tile >= 64

    def kernel(idx_ref, table_ref, out_ref, sem):
        # idx_ref:   (N_pad,) int32 in SMEM (scalar prefetch)
        # table_ref: (V, D) table, left in HBM (memory_space=pl.ANY)
        # out_ref:   (tile, D) output block in VMEM (DMA destination)
        # sem:       single shared DMA semaphore
        base = pl.program_id(0) * tile

        def issue(j):
            tok = idx_ref[base + j]
            pltpu.make_async_copy(table_ref.at[tok], out_ref.at[j], sem).start()

        if use_fori:
            def body(j, carry):
                issue(j)
                return carry
            lax.fori_loop(0, tile, body, 0, unroll=8)
        else:
            for j in range(tile):
                issue(j)

        # One combined wait for all `tile` row DMAs: every row copy signals the
        # same semaphore with its byte count, and this descriptor's byte count
        # equals their sum.  Avoids (tile-1) blocking waits and the SMEM
        # sst->sld forwarding breakage of interleaved index reads + waits.
        if V >= tile:
            pltpu.make_async_copy(
                table_ref.at[pl.ds(0, tile)], out_ref, sem
            ).wait()
        else:
            # Rare shape (V < tile): wait per row on fixed-source descriptors
            # (no SMEM re-reads); byte counts still match.
            for j in range(tile):
                pltpu.make_async_copy(table_ref.at[0], out_ref.at[j], sem).wait()

        # TODO(synk): cross-step prefetch (P4) of the next tile would need a
        # VMEM bounce buffer again; omitted since rows DMA straight into out_ref.

    return kernel


# ----------------------------------------------------------------------------
# Wrapper
# ----------------------------------------------------------------------------
def embedding_forward(indices, table, *, tile_tokens=256, force_dma_gather=False):
    """Pallas equivalent of nn.Embedding(V, D)(indices) -> (B, S, D)."""
    B, S = indices.shape
    V, D = table.shape
    N = B * S
    itemsize = jnp.dtype(table.dtype).itemsize
    d_pad = _round_up(D, 128)

    # Clamp ids so an out-of-range id can never trigger an OOB access.
    idx_flat = jnp.clip(indices.reshape(N).astype(jnp.int32), 0, V - 1)

    # ---- tile selection -----------------------------------------------------
    n8 = _round_up(N, 8)
    tile = _round_up(max(8, min(tile_tokens, n8)), 8)
    if n8 >= 16:
        # Keep >= 2 grid steps so dimension_semantics=("parallel",) can split
        # the token axis across v7x's two TensorCores.
        tile = max(8, min(tile, (n8 // 2) // 8 * 8))
    # Cap the (double-buffered) output block under ~8 MiB so the kernel fits
    # comfortably in v7x's 64 MiB VMEM as well as v5e/v6e.
    while tile > 8 and 2 * tile * d_pad * itemsize > (8 << 20):
        tile -= 8

    n_pad = _round_up(N, tile)
    if n_pad != N:
        idx_flat = jnp.pad(idx_flat, (0, n_pad - N))  # padded slots gather row 0, discarded
    grid = (n_pad // tile,)

    table_vmem_bytes = _round_up(V, 8) * d_pad * itemsize
    resident_ok = (
        (not force_dma_gather)
        and V <= 2048                         # keep the (tile, V) one-hot small
        and table_vmem_bytes <= (16 << 20)    # resident-table budget, v7x-safe
    )

    if resident_ok:
        out_block_bytes = tile * d_pad * itemsize
        idx_block_bytes = tile * 128 * 4
        need = table_vmem_bytes + 2 * (out_block_bytes + idx_block_bytes) + (1 << 20)
        vmem_limit = int(min(max(need, 16 << 20), 48 << 20))

        out_pad = pl.pallas_call(
            _make_resident_kernel(V),
            out_shape=jax.ShapeDtypeStruct((n_pad, D), table.dtype),
            grid=grid,
            in_specs=[
                pl.BlockSpec((tile, 1), lambda i: (i, 0)),   # per-tile ids
                pl.BlockSpec((V, D), lambda i: (0, 0)),      # whole table, resident
            ],
            out_specs=pl.BlockSpec((tile, D), lambda i: (i, 0)),
            compiler_params=pltpu.CompilerParams(
                dimension_semantics=("parallel",),
                vmem_limit_bytes=vmem_limit,
            ),
            cost_estimate=pl.CostEstimate(
                flops=2 * n_pad * V * D,
                transcendentals=0,
                bytes_accessed=n_pad * D * itemsize + V * D * itemsize + n_pad * 4,
            ),
        )(idx_flat.reshape(n_pad, 1), table)
    else:
        out_block_bytes = tile * d_pad * itemsize
        need = 2 * out_block_bytes + (2 << 20)
        vmem_limit = int(min(max(need, 16 << 20), 48 << 20))

        # TODO(synk): for very large N (>~256K tokens) the whole-vector scalar
        # prefetch blows the SMEM budget; switch to per-tile SMEM-blocked ids.
        out_pad = pl.pallas_call(
            _make_dma_gather_kernel(tile, V),
            out_shape=jax.ShapeDtypeStruct((n_pad, D), table.dtype),
            grid_spec=pltpu.PrefetchScalarGridSpec(
                num_scalar_prefetch=1,                       # idx_flat -> SMEM
                grid=grid,
                in_specs=[
                    pl.BlockSpec(memory_space=pl.ANY),       # table stays in HBM
                ],
                out_specs=pl.BlockSpec((tile, D), lambda i, idx: (i, 0)),
                scratch_shapes=[
                    pltpu.SemaphoreType.DMA(()),             # one shared DMA sem
                ],
            ),
            compiler_params=pltpu.CompilerParams(
                dimension_semantics=("parallel",),
                vmem_limit_bytes=vmem_limit,
            ),
            cost_estimate=pl.CostEstimate(
                flops=0,
                transcendentals=0,
                bytes_accessed=2 * n_pad * D * itemsize + n_pad * 4,
            ),
        )(idx_flat, table)

    return out_pad[:N].reshape(B, S, D)


def make_embedding_params(char2id, char_embedding_dim=64, dtype=jnp.float32):
    """Deterministic init mirroring nn.Embedding(len(char2id), dim, padding_idx=pad)."""
    V = len(char2id)
    key = jax.random.PRNGKey(0)
    table = jax.random.normal(key, (V, char_embedding_dim), dtype=dtype)
    pad_idx = char2id['[PAD]']
    table = table.at[pad_idx].set(0.0)  # padding_idx row is zeros in nn.Embedding
    return table


if __name__ == "__main__":
    # ---- Test 1: module demo sizes (V=30, D=64) -> resident one-hot fast path
    chars = ['[PAD]'] + [chr(ord('a') + i) for i in range(26)] + ['0', '1', '2']
    char2id = {c: i for i, c in enumerate(chars)}
    max_length = 8           # sequence length S
    char_embedding_dim = 64  # D
    batch = 2                # B

    table = make_embedding_params(char2id, char_embedding_dim)

    key = jax.random.PRNGKey(0)
    indices = jax.random.randint(
        key, (batch, max_length), minval=0, maxval=len(char2id), dtype=jnp.int32
    )
    # force a couple of PAD positions to exercise padding_idx semantics
    indices = indices.at[0, -1].set(char2id['[PAD]'])
    indices = indices.at[1, 0].set(char2id['[PAD]'])

    out = embedding_forward(indices, table)
    jax.block_until_ready(out)
    ref = table[indices]
    assert out.shape == (batch, max_length, char_embedding_dim)
    assert out.dtype == jnp.float32
    assert bool(jnp.allclose(out, ref)), "resident-path mismatch vs reference gather"

    # ---- Test 2: same shapes forced through the DMA-gather fallback
    out_dma = embedding_forward(indices, table, force_dma_gather=True)
    jax.block_until_ready(out_dma)
    assert bool(jnp.allclose(out_dma, ref)), "dma-path (small) mismatch vs reference"

    # ---- Test 3: larger vocab -> natural DMA-gather fallback
    #      (fori_loop descriptor issue + single combined wait, tile=256, 2 grid steps)
    k1, k2 = jax.random.split(jax.random.PRNGKey(0))
    big_V, big_D = 4096, 128
    big_table = jax.random.normal(k1, (big_V, big_D), dtype=jnp.float32)
    big_idx = jax.random.randint(k2, (2, 256), minval=0, maxval=big_V, dtype=jnp.int32)
    out_big = embedding_forward(big_idx, big_table)
    jax.block_until_ready(out_big)
    ref_big = big_table[big_idx]
    assert bool(jnp.allclose(out_big, ref_big)), "dma-path (large) mismatch vs reference"

    print("KERNEL_OK")
</pallas_src>

<mosaic_0001>
module attributes {stable_mosaic.version = 11 : i64} {
  func.func @kernel(%arg0: i32, %arg1: memref<8x1xi32, #tpu.memory_space<vmem>>, %arg2: memref<30x64xf32, #tpu.memory_space<vmem>>, %arg3: memref<8x64xf32, #tpu.memory_space<vmem>>) attributes {dimension_semantics = [#tpu.dimension_semantics<parallel>], iteration_bounds = array<i64: 2>, scalar_prefetch = 0 : i64, scratch_operands = 0 : i64, tpu.core_type = #tpu.core_type<tc>, window_params = [{transform_indices = @transform_0, window_bounds = array<i64: 8, 1>}, {pipeline_mode = #tpu.pipeline_mode<synchronous>, transform_indices = @transform_1, window_bounds = array<i64: 30, 64>}, {transform_indices = @transform_2, window_bounds = array<i64: 8, 64>}]} {
    %c0 = arith.constant 0 : index
    %c0_0 = arith.constant 0 : index
    %0 = vector.load %arg1[%c0, %c0_0] : memref<8x1xi32, #tpu.memory_space<vmem>>, vector<8x1xi32>
    %1 = tpu.iota {dimensions = array<i32: 1>} : vector<8x30xi32>
    %2 = vector.broadcast %0 : vector<8x1xi32> to vector<8x30xi32>
    %3 = arith.cmpi eq, %2, %1 : vector<8x30xi32>
    %4 = arith.extui %3 : vector<8x30xi1> to vector<8x30xi32>
    %5 = arith.sitofp %4 : vector<8x30xi32> to vector<8x30xf32>
    %c0_1 = arith.constant 0 : index
    %c0_2 = arith.constant 0 : index
    %6 = vector.load %arg2[%c0_1, %c0_2] : memref<30x64xf32, #tpu.memory_space<vmem>>, vector<30x64xf32>
    %cst = arith.constant dense<0.000000e+00> : vector<8x64xf32>
    %7 = tpu.matmul %5, %6, %cst {dimension_numbers = #tpu.dot_dimension_numbers<[1], [0], [0], [1], [0, 0, 1, 1], [], []>} : vector<8x30xf32>, vector<30x64xf32>, vector<8x64xf32> -> vector<8x64xf32>
    %c0_3 = arith.constant 0 : index
    %c0_4 = arith.constant 0 : index
    %8 = vector.load %arg3[%c0_3, %c0_4] : memref<8x64xf32, #tpu.memory_space<vmem>>, vector<8x64xf32>
    tpu.vector_store %arg3[%c0_3, %c0_4], %7 {strides = array<i32>} : memref<8x64xf32, #tpu.memory_space<vmem>>, vector<8x64xf32>,
    return
  }
  func.func @transform_0(%arg0: i32) -> (i32, i32) {
    %c0_i32 = arith.constant 0 : i32
    %c0_i32_0 = arith.constant 0 : i32
    return %arg0, %c0_i32 : i32, i32
  }
  func.func @transform_1(%arg0: i32) -> (i32, i32) {
    %c0_i32 = arith.constant 0 : i32
    %c0_i32_0 = arith.constant 0 : i32
    %c0_i32_1 = arith.constant 0 : i32
    return %c0_i32, %c0_i32_0 : i32, i32
  }
  func.func @transform_2(%arg0: i32) -> (i32, i32) {
    %c0_i32 = arith.constant 0 : i32
    %c0_i32_0 = arith.constant 0 : i32
    return %arg0, %c0_i32 : i32, i32
  }
}

</mosaic_0001>

<bundles_post_ra>
// kernel: tpu_custom_call.1
= control target key start
LH: loop header
LB: loop body
LE: loop exit
PB: predicated region body
PF: predicated region fallthrough
CT: control target
= control target key end

     0   :  { %7 = vsyncpa [#allocation3], 0  ;;  %s650_s0 = inlined_call_operand.vmem [shape: s32[16,1], index: 0, kind: input, shape index: {}]   ;;  %s651_s1 = inlined_call_operand.hbm [shape: f32[30,64], index: 1, kind: input, shape index: {}]   ;;  %s652_s2 = inlined_call_operand.hbm [shape: f32[16,64], index: 2, kind: output, shape index: {}]  }
   0x1   :  { %8 = vsyncpa [#allocation4], 0 }
   0x2   :  { %10 = vsyncpa [#allocation4 + $0x1], 0  ;;  %s533_s9 = smov 0   ;;  %s535_s10 = smov 0  }
   0x3   :  { %s537_s11 = smov 0   ;;  %s539_s12 = smov 0  }
   0x4 LB: > { %s554_s13 = sadd.s32 4294967295, %s509_s12   ;;  %s332_s14 = sadd.s32 4294967294, %s509_s12   ;;  %s509_s12 = sphi %s539_s12, %s660_s12   ;;  %s505_s11 = sphi %s537_s11, %s659_s11   ;;  %s501_s10 = sphi %s535_s10, %s658_s10   ;;  %s497_s9 = sphi %s533_s9, %s657_s9  }
   0x5   : > { %s558_s15 = sadd.s32 1, %s509_s12   ;;  %s70_s16 = sadd.s32 1, %s505_s11 }
   0x6   : > { %s67_s17 = ssub.s32 %s509_s12, %s558_s15  ;;  %p80_p0 = scmp.ne.s32.totalorder %s505_s11, %s501_s10 }
   0x7   : > { %p68_p1 = scmp.eq.s32.totalorder %s67_s17, 0  ;;  %p81_p2 = scmp.eq.s32.totalorder %s554_s13, 1 }
   0x8   : > { %p86_p3 = scmp.ne.s32.totalorder %s501_s10, %s497_s9  ;;  %p87_p4 = scmp.eq.s32.totalorder %s332_s14, 1 }
   0x9   : > { %s569_s18 = scalar_select %p68_p1, %s505_s11, %s70_s16  }
   0xa   : > { %p571_p5 = por %p81_p2, %p80_p0  ;;  %p575_p6 = por %p87_p4, %p86_p3 }
   0xb   : > { %p333_p7 = scmp.ge.s32.totalorder %s509_s12, 1  ;;  %p94_p8 = scmp.lt.s32.totalorder %s509_s12, 3 }
   0xc   : > { %s654_s20 = scalar_select %p575_p6, 1, 0 }
   0xd   : > { %p377_p9 = scmp.eq.s32.totalorder %s554_s13, 0  ;;  %p582_p10 = pnand %p333_p7, %p94_p8 }
   0xe   : > { %s511_s22 = smov [#allocation2]  }
   0xf   : > { %s106_s23 = sshll.u32 %s511_s22, 4  ;;  %p369_p11 = pneg %p582_p10  ;;  %s107_s23 = int_to_ptr.vmem [resolvable:$true] %s106_s23 }
  0x10   : > { %s430_s24 = scalar_lea.vmem %s107_s23, 512  ;;  %p438_p3 = scmp.lt.s32.totalorder %s107_s23, %s107_s23 }
  0x11   : > { %p370_p12 = pnand %p377_p9, %p369_p11  ;;  %p431_p0 = scmp.ne.s32.totalorder %s107_s23, %s430_s24 }
  0x12   : > { %p439_p4 = scmp.lt.s32.totalorder %s430_s24, %s430_s24 }
  0x13   : > { %p421_p13 = pneg %p370_p12 }
  0x14   : > { %p440_p6 = por %p439_p4, %p438_p3 }
  0x15   : > { %p433_p1 = pnand %p431_p0, %p421_p13 }
  0x17   : > { %p434_p2 = pneg %p433_p1 }
  0x19   : > { %p441_p7 = pnand %p440_p6, %p434_p2 }
  0x1b   : > { %444 = shalt.err (!%p441_p7)
}
  0x1c   : > { %s512_s25 = smov 128   ;;  %s513_s26 = smov 8  }
  0x1d   : > { %372 = dma.hbm_to_vmem [thread:$0]  (!%p370_p12), %s651_s1, 512, %s107_s23, [#allocation3], %s512_s25, %s512_s25, %s513_s26  }
  0x1e   : > { %129 = sbr.rel (%p582_p10) target bundleno = 376 (0x178), region = 28 }
  0x23   : > { %488 = dma.done.wait (%p377_p9), [#allocation3], 512  }
  0x24   : > { %490 = vsyncadd (%p377_p9), [#allocation3], 4294966784  ;;  %p150_p8 = scmp.lt.s32.totalorder %s554_s13, 1  ;;  %v514_v0 = vmov 0   ;;  %v515_v1 = vmov 0.0   ;;  %vm171_vm0 = vcmask 1045504   ;;  %v155_v7 = vlaneseq }
  0x25   : > { %418 = vset.pattern.permute.xlu0 %v514_v0  ;;  %352 = vmatprep.subr.mxu0 %v515_v1  ;;  %vm516_vm1 = vmmov 0   ;;  %v166_v3 = vld [vmem:[#allocation2 + $0x18] sm:$0x3f]  ;;  %v165_v4 = vld [vmem:[#allocation2 + $0x10] sm:$0xff]  ;;  %v164_v5 = vld [vmem:[#allocation2 + $0x8] sm:$0xff]  ;;  %vm167_vm2 = vcmask 244736  }
  0x26   : > { %s151_s29 = scalar_select %p150_p8, %s554_s13, 1  ;;  %360 = vmatprep.mubr.msk.f32.mxu0 %vm516_vm1, %v515_v1  ;;  %353 = vmatpush3.msk.msra.mxu0 %vm171_vm0, %v166_v3  ;;  %v163_v6 = vld [vmem:[#allocation2] sm:$0xff]  ;;  %v156_v8 = vand.u32 127, %v155_v7  ;;  %vm245_vm4 = vcmask 523264  }
  0x27   : > { %354 = vmatprep.subr.mxu0 %v515_v1  ;;  %s147_s6 = sand.u32 1, %s501_s10   ;;  %s344_s8 = sshll.u32 %s554_s13, 7 }
  0x28   : > { %s339_s30 = sshll.u32 %s151_s29, 3  ;;  %355 = vmatpush3.msra.mxu0 %v165_v4  ;;  %s338_s7 = sshll.u32 %s147_s6, 3 }
  0x29   : > { %s153_s5 = scalar_lea.vmem %s650_s0, %s339_s30  ;;  %356 = vmatprep.subr.mxu0 %v515_v1  ;;  %s149_s14 = scalar_lea.vmem [#allocation5], %s338_s7 }
  0x2a   : > { %v154_v2 = vld [vmem:[%s153_s5] sm:$0xff]  ;;  %357 = vmatpush3.msra.mxu0 %v164_v5  ;;  %s261_s16 = sshll.u32 %s149_s14, 4  ;;  %s609_s22 = scalar_lea.hbm %s652_s2, %s344_s8  ;;  %s611_s16 = int_to_ptr.vmem [resolvable:$true] %s261_s16 }
  0x2b   : > { %158 = vperm.xlu0 %418, %v154_v2   ;;  %358 = vmatprep.subr.mxu0 %v515_v1  ;;  %s248_s23 = scalar_lea.sflag [#allocation4], %s147_s6  ;;  %s445_s24 = scalar_lea.vmem %s611_s16, 128 }
  0x2c   : > { %359 = vmatpush3.msra.mxu0 %v163_v6  ;;  %p446_p6 = scmp.ne.s32.totalorder %s611_s16, %s445_s24  ;;  %s517_s13 = smov [#allocation5]  }
  0x2d   : > { %s449_s25 = sshll.u32 %s517_s13, 4  ;;  %s450_s25 = int_to_ptr.vmem [resolvable:$false] %s449_s25 }
  0x2e   : > { %p447_p9 = pnand %p446_p6, %p571_p5  ;;  %s451_s26 = scalar_lea.vmem %s450_s25, 256 }
  0x2f   : > { %p452_p11 = scmp.lt.s32.totalorder %s611_s16, %s450_s25  ;;  %p453_p12 = scmp.lt.s32.totalorder %s451_s26, %s445_s24 }
  0x30   : > { %p448_p10 = pneg %p447_p9 }
  0x31   : > { %p454_p13 = por %p453_p12, %p452_p11 }
  0x33   : > { %p455_p0 = pnand %p454_p13, %p448_p10 }
  0xa6   : > { %v159_v9 = vpop.permute.xlu0 %158 }
  0xa7   : > { %vm160_vm3 = vcmp.eq.s32.totalorder %v159_v9, %v156_v8 }
  0xa8   : > { %v340_v10 = vsel %vm160_vm3, 1.0, %v515_v1 }
  0xa9   : > { %361 = vmatmul.mubr.msk.f32.vlgmr.msra.gmra.mxu0 %vm167_vm2, %v340_v10 }
 0x169   : > { %v241_v11 = vpop.f32.mrf.mxu0 }
 0x16a   : > { %246 = vst.msk [vmem:[%s149_s14] sm:$0xff] %vm245_vm4, %v241_v11 }
 0x16b   : > { %v362_v12 = vpop.f32.mrf.mxu0 }
 0x16c   : > { %458 = shalt.err (!%p455_p0)
}
 0x16d   : > { %s459_s27 = scalar_lea.hbm %s609_s22, 128  ;;  %s463_s30 = scalar_lea.hbm %s652_s2, 256 }
 0x16e   : > { %p460_p1 = scmp.ne.s32.totalorder %s609_s22, %s459_s27  ;;  %p464_p4 = scmp.lt.s32.totalorder %s609_s22, %s652_s2 }
 0x16f   : > { %p465_p7 = scmp.lt.s32.totalorder %s463_s30, %s459_s27 }
 0x170   : > { %p461_p2 = pnand %p460_p1, %p571_p5 }
 0x171   : > { %p466_p8 = por %p465_p7, %p464_p4 }
 0x172   : > { %p462_p3 = pneg %p461_p2 }
 0x174   : > { %p467_p6 = pnand %p466_p8, %p462_p3 }
 0x176   : > { %470 = shalt.err (!%p467_p6)
}
 0x177   : > { %367 = dma.vmem_to_hbm [thread:$0]  (%p571_p5), %s611_s16, 128, %s609_s22, %s248_s23  }
 0x178 PF: > { %p379_p9 = scmp.ge.s32.totalorder %s509_s12, 2  ;;  %s273_s5 = sand.u32 1, %s497_s9  }
 0x179   : > { %p656_p10 = scmp.ne.s32.totalorder %s654_s20, 0  ;;  %s274_s6 = scalar_lea.sflag [#allocation4], %s273_s5 }
 0x17b   : > { %p374_p11 = pnand %p379_p9, %p656_p10 }
 0x17d   : > { %p375_p12 = pneg %p374_p11 }
 0x17f   : > { %492 = dma.done.wait (%p375_p12), %s274_s6, 128  }
 0x180   : > { %494 = vsyncadd (%p375_p12), %s274_s6, 4294967168  ;;  %p13_p13 = scmp.ge.s32.totalorder %s558_s15, 4   ;;  %s657_s9 = smov %s501_s10 }
 0x181   : > { %s658_s10 = smov %s505_s11  ;;  %s659_s11 = smov %s569_s18 }
 0x182   : > { %s660_s12 = smov %s558_s15  ;;  %15 = sbr.rel (!%p13_p13) target bundleno = 4 (0x4), region = 68 }
 0x187   :  { %279 = vsyncpa [#allocation3], 1 }
 0x188   :  { %281 = vsyncpa [#allocation3 + $0x1], 1 }
 0x189   :  { %282 = vsyncpa [#allocation4], 1 }
 0x18a   :  { %284 = vsyncpa [#allocation4 + $0x1], 1 }

</bundles_post_ra>
